<compile_context>
chip_gen: v5e
topology: v5e:2x2
jax: 0.10.0
libtpu: 0.0.40
codegen_flags: <defaults>
</compile_context>

<pallas_src>
from collections import defaultdict
import functools

import numpy as np
import jax
import jax.numpy as jnp
from jax.experimental import pallas as pl
from jax.experimental.pallas import tpu as pltpu

LABEL_SMOOTHING = 0.1
_NEG_BIG = -1e30


def _round_up(x, m):
    return (x + m - 1) // m * m


# ----------------------------- Pallas kernel -------------------------------

def _hier_ce_kernel(logits_ref, tgt_ref, out_ref, *, ncls, cpad, offs, eps):
    """One grid step = one batch tile, all classification heads.

    logits_ref: VMEM [Crows, TILE_B]  class-major concat (head h = rows offs[h]:offs[h]+cpad[h],
                                      batch samples on lanes)
    tgt_ref   : VMEM int32 [H, TILE_B]  per-head target class (-1 = ignore)
    out_ref   : VMEM f32  [H, TILE_B]   per-head per-sample smoothed CE (0 where ignored)
    """
    for i, (c, cp, off) in enumerate(zip(ncls, cpad, offs)):
        x = logits_ref[off:off + cp, :].astype(jnp.float32)        # [cp, TILE_B]
        t = tgt_ref[i:i + 1, :]                                    # [1, TILE_B] int32
        rows = jax.lax.broadcasted_iota(jnp.int32, x.shape, 0)
        ok = rows < c                                              # only <=7 pad rows masked

        # log-sum-exp over the head's real classes only.
        xm = jnp.where(ok, x, _NEG_BIG) if cp != c else x
        m = jnp.max(xm, axis=0, keepdims=True)                     # [1, TILE_B]
        lse = m + jnp.log(jnp.sum(jnp.exp(xm - m), axis=0, keepdims=True))

        # Label-smoothing CE as one merged weighted reduce:
        #   loss = lse - sum_j w_j * x_j ,  w_j = eps/C + (1-eps)*[j == target]
        w = (eps / c) + (1.0 - eps) * (rows == t).astype(jnp.float32)
        if cp != c:
            w = jnp.where(ok, w, 0.0)
        s = jnp.sum(w * x, axis=0, keepdims=True)                  # [1, TILE_B]

        valid = (t >= 0).astype(jnp.float32)                       # ignore_index == -1
        out_ref[i:i + 1, :] = (lse - s) * valid


# --------------------------- Fused device function --------------------------

def _hier_loss(embeddings, group_logits, fam_logits, targets, gweights, *, alpha):
    """Jit-able: build the class-major concat, run the tiled kernel, combine losses."""
    heads = (group_logits,) + tuple(fam_logits)
    n_heads = len(heads)
    b = group_logits.shape[0]
    cdtype = group_logits.dtype            # explicit: bf16 in -> bf16 DMA (no promotion)
    itemsize = jnp.dtype(cdtype).itemsize

    ncls = tuple(int(h.shape[1]) for h in heads)
    cpad = tuple(_round_up(c, 8) for c in ncls)      # class rows on sublanes -> pad to 8
    offs = tuple(int(o) for o in np.cumsum((0,) + cpad[:-1]))
    crows = offs[-1] + cpad[-1]

    # ---- batch tile size from a ~24 MiB VMEM budget (safe on v5e / v6e / v7x) ----
    bytes_per_col = 2 * itemsize * crows + 6 * 4 * max(cpad)   # dbl-buffered block + f32 temps
    cap = int((24 << 20) // max(bytes_per_col, 1))
    cap = max(128, min(512, (cap // 128) * 128))
    if b <= cap:
        tile_b, b_pad = b, b                          # single full-width tile
    else:
        tile_b = cap
        b_pad = _round_up(b, tile_b)
    n_bt = b_pad // tile_b

    # ---- class-major concat: head h -> rows offs[h]:offs[h]+cpad[h], batch on lanes ----
    parts = [jnp.pad(h.astype(cdtype).T, ((0, cp - c), (0, b_pad - b)))
             for h, c, cp in zip(heads, ncls, cpad)]
    cls_cat = parts[0] if len(parts) == 1 else jnp.concatenate(parts, axis=0)  # [crows, b_pad]

    tgt = targets.astype(jnp.int32)                                            # [H, B]
    tgt_pad = jnp.pad(tgt, ((0, 0), (0, b_pad - b)), constant_values=-1)       # [H, b_pad]

    kernel = functools.partial(_hier_ce_kernel, ncls=ncls, cpad=cpad, offs=offs,
                               eps=LABEL_SMOOTHING)

    block_bytes = itemsize * crows * tile_b
    vmem_limit = int(min(48 << 20, max(32 << 20, 4 * block_bytes + (4 << 20))))
    cost = pl.CostEstimate(
        flops=int(6 * b_pad * sum(cpad)),
        transcendentals=int(b_pad * sum(cpad) + n_heads * b_pad),
        bytes_accessed=int(itemsize * crows * b_pad + 8 * n_heads * b_pad))

    per_sample = pl.pallas_call(
        kernel,
        out_shape=jax.ShapeDtypeStruct((n_heads, b_pad), jnp.float32),
        grid=(n_bt,),
        in_specs=[pl.BlockSpec((crows, tile_b), lambda bt: (0, bt)),
                  pl.BlockSpec((n_heads, tile_b), lambda bt: (0, bt))],
        out_specs=pl.BlockSpec((n_heads, tile_b), lambda bt: (0, bt)),
        compiler_params=pltpu.CompilerParams(
            dimension_semantics=("parallel",),        # v7x: 2 TCs split batch tiles
            vmem_limit_bytes=vmem_limit),
        cost_estimate=cost,
    )(cls_cat, tgt_pad)                                                        # [H, b_pad]

    num = jnp.sum(per_sample, axis=1)                              # [H]
    den = jnp.sum((tgt >= 0).astype(jnp.float32), axis=1)          # [H]
    # TODO(synk): PyTorch cross_entropy returns NaN when every sample of a head is
    # ignored; we clamp the denominator instead (masked by has_valid downstream).
    ce = num / jnp.maximum(den, 1.0)

    group_loss = ce[0]
    has_valid = (den[1:] > 0).astype(jnp.float32)
    n_valid = jnp.sum(has_valid)
    family_loss = jnp.sum(gweights[1:] * ce[1:] * has_valid) / jnp.maximum(n_valid, 1.0)

    emb = embeddings.astype(jnp.float32)               # L2 regularizer hoisted out of the kernel
    l2 = jnp.mean(jnp.sqrt(jnp.sum(emb * emb, axis=1)))

    return alpha * group_loss + (1.0 - alpha) * family_loss + 0.001 * l2


# ---------------------------- Module equivalent -----------------------------

class HierarchicalLossPallas:
    """Pallas-TPU equivalent of HierarchicalLoss.forward."""

    def __init__(self, family_to_group, alpha=0.3):
        self.family_to_group = dict(family_to_group)
        self.alpha = float(alpha)
        self.group_to_families = defaultdict(list)
        for family, group in self.family_to_group.items():
            self.group_to_families[group].append(family)
        self.family_to_idx = {
            g: {fam: i for i, fam in enumerate(sorted(fams))}
            for g, fams in self.group_to_families.items()
        }
        self._group_ids = list(self.group_to_families.keys())
        n_fam = max(len(self.family_to_group), 1)
        # Device-resident constants cached once (no per-call H2D transfer).
        self._gweights = jnp.asarray(
            np.array([1.0] + [len(self.group_to_families[g]) / n_fam
                              for g in self._group_ids], dtype=np.float32))
        self._fused = jax.jit(functools.partial(_hier_loss, alpha=self.alpha))

    def _encode_targets(self, true_families, batch):
        """Host-side string->int glue (the only non-jittable part)."""
        n_heads = 1 + len(self._group_ids)
        targets = np.full((n_heads, batch), -1, dtype=np.int32)
        gid_pos = {g: i for i, g in enumerate(self._group_ids)}
        for bi, fam in enumerate(true_families):
            g = self.family_to_group.get(fam, -1)
            targets[0, bi] = g
            if g != -1:
                targets[1 + gid_pos[g], bi] = self.family_to_idx[g].get(fam, 0)
        return targets

    def __call__(self, embeddings, group_logits, family_logits, true_families):
        if not isinstance(true_families, list):
            true_families = [true_families]
        batch = group_logits.shape[0]
        targets = self._encode_targets(true_families, batch)
        fam_tuple = tuple(family_logits[str(g)] for g in self._group_ids)
        return self._fused(embeddings, group_logits, fam_tuple,
                           jnp.asarray(targets), self._gweights)


# ---------------------------- NumPy reference -------------------------------

def _ref_ce(logits, targets, ignore_index=None, eps=LABEL_SMOOTHING):
    logits = np.asarray(logits, np.float64)
    b, c = logits.shape
    m = logits.max(-1, keepdims=True)
    logp = logits - m - np.log(np.exp(logits - m).sum(-1, keepdims=True))
    total, n_valid = 0.0, 0
    for i in range(b):
        t = int(targets[i])
        if ignore_index is not None and t == ignore_index:
            continue
        q = np.full(c, eps / c)
        q[t] += 1.0 - eps
        total += -(q * logp[i]).sum()
        n_valid += 1
    return total / max(n_valid, 1)


def _ref_forward(module, embeddings, group_logits, family_logits, true_families):
    true_groups = np.array([module.family_to_group.get(f, -1) for f in true_families])
    group_loss = _ref_ce(group_logits, true_groups, ignore_index=-1)
    family_loss, valid_samples = 0.0, 0
    for group_id in module.group_to_families:
        mask = true_groups == group_id
        if not mask.any():
            continue
        sub = np.asarray(family_logits[str(group_id)])[mask]
        true_idx = [module.family_to_idx[group_id].get(f, 0)
                    for f in true_families
                    if module.family_to_group.get(f) == group_id]
        if not true_idx:
            continue
        gw = len(module.group_to_families[group_id]) / len(module.family_to_group)
        family_loss += gw * _ref_ce(sub, np.array(true_idx))
        valid_samples += 1
    if valid_samples > 0:
        family_loss /= valid_samples
    total = module.alpha * group_loss + (1 - module.alpha) * family_loss
    total += 0.001 * np.linalg.norm(np.asarray(embeddings, np.float64), axis=1).mean()
    return total


# --------------------------------- Main --------------------------------------

if __name__ == "__main__":
    family_to_group = {
        "adload": 0, "agent": 0, "allaple": 0,
        "bifrose": 1, "ceeinject": 1,
        "delf": 2, "dialplatform": 2,
    }
    true_families = ["agent", "ceeinject", "delf", "unknown_family"]

    B, D = 4, 32
    key = jax.random.PRNGKey(0)
    k_emb, k_grp, k0, k1, k2 = jax.random.split(key, 5)
    embeddings = jax.random.normal(k_emb, (B, D), jnp.float32)
    group_logits = jax.random.normal(k_grp, (B, 3), jnp.float32)
    family_logits = {
        "0": jax.random.normal(k0, (B, 3), jnp.float32),
        "1": jax.random.normal(k1, (B, 2), jnp.float32),
        "2": jax.random.normal(k2, (B, 2), jnp.float32),
    }

    loss_mod = HierarchicalLossPallas(family_to_group, alpha=0.3)
    total = loss_mod(embeddings, group_logits, family_logits, true_families)
    total = jax.block_until_ready(total)

    ref = _ref_forward(loss_mod, np.asarray(embeddings), np.asarray(group_logits),
                       {k: np.asarray(v) for k, v in family_logits.items()},
                       true_families)
    np.testing.assert_allclose(float(total), float(ref), rtol=1e-5, atol=1e-5)
    print("KERNEL_OK")
</pallas_src>

<mosaic_0001>
module attributes {stable_mosaic.version = 11 : i64} {
  func.func @_hier_ce_kernel(%arg0: i32, %arg1: memref<32x4xf32, #tpu.memory_space<vmem>>, %arg2: memref<4x4xi32, #tpu.memory_space<vmem>>, %arg3: memref<4x4xf32, #tpu.memory_space<vmem>>) attributes {dimension_semantics = [#tpu.dimension_semantics<parallel>], iteration_bounds = array<i64: 1>, scalar_prefetch = 0 : i64, scratch_operands = 0 : i64, tpu.core_type = #tpu.core_type<tc>, window_params = [{transform_indices = @transform_0, window_bounds = array<i64: 32, 4>}, {transform_indices = @transform_1, window_bounds = array<i64: 4, 4>}, {transform_indices = @transform_2, window_bounds = array<i64: 4, 4>}]} {
    %c0 = arith.constant 0 : index
    %c0_0 = arith.constant 0 : index
    %0 = vector.load %arg1[%c0, %c0_0] : memref<32x4xf32, #tpu.memory_space<vmem>>, vector<8x4xf32>
    %c0_1 = arith.constant 0 : index
    %c0_2 = arith.constant 0 : index
    %1 = vector.load %arg2[%c0_1, %c0_2] : memref<4x4xi32, #tpu.memory_space<vmem>>, vector<1x4xi32>
    %2 = tpu.iota {dimensions = array<i32: 0>} : vector<8x4xi32>
    %c3_i32 = arith.constant 3 : i32
    %3 = vector.broadcast %c3_i32 : i32 to vector<8x4xi32>
    %4 = arith.cmpi slt, %2, %3 : vector<8x4xi32>
    %cst = arith.constant -1.000000e+30 : f32
    %5 = vector.broadcast %cst : f32 to vector<8x4xf32>
    %6 = arith.select %4, %0, %5 : vector<8x4xi1>, vector<8x4xf32>
    %cst_3 = arith.constant dense<0xFF800000> : vector<4xf32>
    %7 = vector.multi_reduction <maximumf>, %6, %cst_3 [0] : vector<8x4xf32> to vector<4xf32>
    %8 = vector.shape_cast %7 : vector<4xf32> to vector<1x4xf32>
    %9 = vector.broadcast %8 : vector<1x4xf32> to vector<8x4xf32>
    %10 = arith.subf %6, %9 : vector<8x4xf32>
    %11 = math.exp %10 : vector<8x4xf32>
    %cst_4 = arith.constant dense<0.000000e+00> : vector<4xf32>
    %12 = vector.multi_reduction <add>, %11, %cst_4 [0] : vector<8x4xf32> to vector<4xf32>
    %13 = vector.shape_cast %12 : vector<4xf32> to vector<1x4xf32>
    %14 = math.log %13 : vector<1x4xf32>
    %15 = arith.addf %8, %14 : vector<1x4xf32>
    %16 = vector.broadcast %1 : vector<1x4xi32> to vector<8x4xi32>
    %17 = arith.cmpi eq, %2, %16 : vector<8x4xi32>
    %18 = arith.extui %17 : vector<8x4xi1> to vector<8x4xi32>
    %19 = arith.sitofp %18 : vector<8x4xi32> to vector<8x4xf32>
    %cst_5 = arith.constant 0.899999976 : f32
    %20 = vector.broadcast %cst_5 : f32 to vector<8x4xf32>
    %21 = arith.mulf %20, %19 : vector<8x4xf32>
    %cst_6 = arith.constant 0.0333333351 : f32
    %22 = vector.broadcast %cst_6 : f32 to vector<8x4xf32>
    %23 = arith.addf %22, %21 : vector<8x4xf32>
    %cst_7 = arith.constant 0.000000e+00 : f32
    %24 = vector.broadcast %cst_7 : f32 to vector<8x4xf32>
    %25 = arith.select %4, %23, %24 : vector<8x4xi1>, vector<8x4xf32>
    %26 = arith.mulf %25, %0 : vector<8x4xf32>
    %cst_8 = arith.constant dense<0.000000e+00> : vector<4xf32>
    %27 = vector.multi_reduction <add>, %26, %cst_8 [0] : vector<8x4xf32> to vector<4xf32>
    %28 = vector.shape_cast %27 : vector<4xf32> to vector<1x4xf32>
    %c0_i32 = arith.constant 0 : i32
    %29 = vector.broadcast %c0_i32 : i32 to vector<1x4xi32>
    %30 = arith.cmpi sge, %1, %29 : vector<1x4xi32>
    %31 = arith.extui %30 : vector<1x4xi1> to vector<1x4xi32>
    %32 = arith.sitofp %31 : vector<1x4xi32> to vector<1x4xf32>
    %33 = arith.subf %15, %28 : vector<1x4xf32>
    %34 = arith.mulf %33, %32 : vector<1x4xf32>
    %c0_9 = arith.constant 0 : index
    %c0_10 = arith.constant 0 : index
    %35 = vector.load %arg3[%c0_9, %c0_10] : memref<4x4xf32, #tpu.memory_space<vmem>>, vector<1x4xf32>
    tpu.vector_store %arg3[%c0_9, %c0_10], %34 {strides = array<i32>} : memref<4x4xf32, #tpu.memory_space<vmem>>, vector<1x4xf32>,
    %c8 = arith.constant 8 : index
    %c0_11 = arith.constant 0 : index
    %36 = vector.load %arg1[%c8, %c0_11] : memref<32x4xf32, #tpu.memory_space<vmem>>, vector<8x4xf32>
    %c1 = arith.constant 1 : index
    %c0_12 = arith.constant 0 : index
    %37 = vector.load %arg2[%c1, %c0_12] : memref<4x4xi32, #tpu.memory_space<vmem>>, vector<1x4xi32>
    %38 = tpu.iota {dimensions = array<i32: 0>} : vector<8x4xi32>
    %c3_i32_13 = arith.constant 3 : i32
    %39 = vector.broadcast %c3_i32_13 : i32 to vector<8x4xi32>
    %40 = arith.cmpi slt, %38, %39 : vector<8x4xi32>
    %cst_14 = arith.constant -1.000000e+30 : f32
    %41 = vector.broadcast %cst_14 : f32 to vector<8x4xf32>
    %42 = arith.select %40, %36, %41 : vector<8x4xi1>, vector<8x4xf32>
    %cst_15 = arith.constant dense<0xFF800000> : vector<4xf32>
    %43 = vector.multi_reduction <maximumf>, %42, %cst_15 [0] : vector<8x4xf32> to vector<4xf32>
    %44 = vector.shape_cast %43 : vector<4xf32> to vector<1x4xf32>
    %45 = vector.broadcast %44 : vector<1x4xf32> to vector<8x4xf32>
    %46 = arith.subf %42, %45 : vector<8x4xf32>
    %47 = math.exp %46 : vector<8x4xf32>
    %cst_16 = arith.constant dense<0.000000e+00> : vector<4xf32>
    %48 = vector.multi_reduction <add>, %47, %cst_16 [0] : vector<8x4xf32> to vector<4xf32>
    %49 = vector.shape_cast %48 : vector<4xf32> to vector<1x4xf32>
    %50 = math.log %49 : vector<1x4xf32>
    %51 = arith.addf %44, %50 : vector<1x4xf32>
    %52 = vector.broadcast %37 : vector<1x4xi32> to vector<8x4xi32>
    %53 = arith.cmpi eq, %38, %52 : vector<8x4xi32>
    %54 = arith.extui %53 : vector<8x4xi1> to vector<8x4xi32>
    %55 = arith.sitofp %54 : vector<8x4xi32> to vector<8x4xf32>
    %cst_17 = arith.constant 0.899999976 : f32
    %56 = vector.broadcast %cst_17 : f32 to vector<8x4xf32>
    %57 = arith.mulf %56, %55 : vector<8x4xf32>
    %cst_18 = arith.constant 0.0333333351 : f32
    %58 = vector.broadcast %cst_18 : f32 to vector<8x4xf32>
    %59 = arith.addf %58, %57 : vector<8x4xf32>
    %cst_19 = arith.constant 0.000000e+00 : f32
    %60 = vector.broadcast %cst_19 : f32 to vector<8x4xf32>
    %61 = arith.select %40, %59, %60 : vector<8x4xi1>, vector<8x4xf32>
    %62 = arith.mulf %61, %36 : vector<8x4xf32>
    %cst_20 = arith.constant dense<0.000000e+00> : vector<4xf32>
    %63 = vector.multi_reduction <add>, %62, %cst_20 [0] : vector<8x4xf32> to vector<4xf32>
    %64 = vector.shape_cast %63 : vector<4xf32> to vector<1x4xf32>
    %c0_i32_21 = arith.constant 0 : i32
    %65 = vector.broadcast %c0_i32_21 : i32 to vector<1x4xi32>
    %66 = arith.cmpi sge, %37, %65 : vector<1x4xi32>
    %67 = arith.extui %66 : vector<1x4xi1> to vector<1x4xi32>
    %68 = arith.sitofp %67 : vector<1x4xi32> to vector<1x4xf32>
    %69 = arith.subf %51, %64 : vector<1x4xf32>
    %70 = arith.mulf %69, %68 : vector<1x4xf32>
    %c1_22 = arith.constant 1 : index
    %c0_23 = arith.constant 0 : index
    %71 = vector.load %arg3[%c1_22, %c0_23] : memref<4x4xf32, #tpu.memory_space<vmem>>, vector<1x4xf32>
    tpu.vector_store %arg3[%c1_22, %c0_23], %70 {strides = array<i32>} : memref<4x4xf32, #tpu.memory_space<vmem>>, vector<1x4xf32>,
    %c16 = arith.constant 16 : index
    %c0_24 = arith.constant 0 : index
    %72 = vector.load %arg1[%c16, %c0_24] : memref<32x4xf32, #tpu.memory_space<vmem>>, vector<8x4xf32>
    %c2 = arith.constant 2 : index
    %c0_25 = arith.constant 0 : index
    %73 = vector.load %arg2[%c2, %c0_25] : memref<4x4xi32, #tpu.memory_space<vmem>>, vector<1x4xi32>
    %74 = tpu.iota {dimensions = array<i32: 0>} : vector<8x4xi32>
    %c2_i32 = arith.constant 2 : i32
    %75 = vector.broadcast %c2_i32 : i32 to vector<8x4xi32>
    %76 = arith.cmpi slt, %74, %75 : vector<8x4xi32>
    %cst_26 = arith.constant -1.000000e+30 : f32
    %77 = vector.broadcast %cst_26 : f32 to vector<8x4xf32>
    %78 = arith.select %76, %72, %77 : vector<8x4xi1>, vector<8x4xf32>
    %cst_27 = arith.constant dense<0xFF800000> : vector<4xf32>
    %79 = vector.multi_reduction <maximumf>, %78, %cst_27 [0] : vector<8x4xf32> to vector<4xf32>
    %80 = vector.shape_cast %79 : vector<4xf32> to vector<1x4xf32>
    %81 = vector.broadcast %80 : vector<1x4xf32> to vector<8x4xf32>
    %82 = arith.subf %78, %81 : vector<8x4xf32>
    %83 = math.exp %82 : vector<8x4xf32>
    %cst_28 = arith.constant dense<0.000000e+00> : vector<4xf32>
    %84 = vector.multi_reduction <add>, %83, %cst_28 [0] : vector<8x4xf32> to vector<4xf32>
    %85 = vector.shape_cast %84 : vector<4xf32> to vector<1x4xf32>
    %86 = math.log %85 : vector<1x4xf32>
    %87 = arith.addf %80, %86 : vector<1x4xf32>
    %88 = vector.broadcast %73 : vector<1x4xi32> to vector<8x4xi32>
    %89 = arith.cmpi eq, %74, %88 : vector<8x4xi32>
    %90 = arith.extui %89 : vector<8x4xi1> to vector<8x4xi32>
    %91 = arith.sitofp %90 : vector<8x4xi32> to vector<8x4xf32>
    %cst_29 = arith.constant 0.899999976 : f32
    %92 = vector.broadcast %cst_29 : f32 to vector<8x4xf32>
    %93 = arith.mulf %92, %91 : vector<8x4xf32>
    %cst_30 = arith.constant 5.000000e-02 : f32
    %94 = vector.broadcast %cst_30 : f32 to vector<8x4xf32>
    %95 = arith.addf %94, %93 : vector<8x4xf32>
    %cst_31 = arith.constant 0.000000e+00 : f32
    %96 = vector.broadcast %cst_31 : f32 to vector<8x4xf32>
    %97 = arith.select %76, %95, %96 : vector<8x4xi1>, vector<8x4xf32>
    %98 = arith.mulf %97, %72 : vector<8x4xf32>
    %cst_32 = arith.constant dense<0.000000e+00> : vector<4xf32>
    %99 = vector.multi_reduction <add>, %98, %cst_32 [0] : vector<8x4xf32> to vector<4xf32>
    %100 = vector.shape_cast %99 : vector<4xf32> to vector<1x4xf32>
    %c0_i32_33 = arith.constant 0 : i32
    %101 = vector.broadcast %c0_i32_33 : i32 to vector<1x4xi32>
    %102 = arith.cmpi sge, %73, %101 : vector<1x4xi32>
    %103 = arith.extui %102 : vector<1x4xi1> to vector<1x4xi32>
    %104 = arith.sitofp %103 : vector<1x4xi32> to vector<1x4xf32>
    %105 = arith.subf %87, %100 : vector<1x4xf32>
    %106 = arith.mulf %105, %104 : vector<1x4xf32>
    %c2_34 = arith.constant 2 : index
    %c0_35 = arith.constant 0 : index
    %107 = vector.load %arg3[%c2_34, %c0_35] : memref<4x4xf32, #tpu.memory_space<vmem>>, vector<1x4xf32>
    tpu.vector_store %arg3[%c2_34, %c0_35], %106 {strides = array<i32>} : memref<4x4xf32, #tpu.memory_space<vmem>>, vector<1x4xf32>,
    %c24 = arith.constant 24 : index
    %c0_36 = arith.constant 0 : index
    %108 = vector.load %arg1[%c24, %c0_36] : memref<32x4xf32, #tpu.memory_space<vmem>>, vector<8x4xf32>
    %c3 = arith.constant 3 : index
    %c0_37 = arith.constant 0 : index
    %109 = vector.load %arg2[%c3, %c0_37] : memref<4x4xi32, #tpu.memory_space<vmem>>, vector<1x4xi32>
    %110 = tpu.iota {dimensions = array<i32: 0>} : vector<8x4xi32>
    %c2_i32_38 = arith.constant 2 : i32
    %111 = vector.broadcast %c2_i32_38 : i32 to vector<8x4xi32>
    %112 = arith.cmpi slt, %110, %111 : vector<8x4xi32>
    %cst_39 = arith.constant -1.000000e+30 : f32
    %113 = vector.broadcast %cst_39 : f32 to vector<8x4xf32>
    %114 = arith.select %112, %108, %113 : vector<8x4xi1>, vector<8x4xf32>
    %cst_40 = arith.constant dense<0xFF800000> : vector<4xf32>
    %115 = vector.multi_reduction <maximumf>, %114, %cst_40 [0] : vector<8x4xf32> to vector<4xf32>
    %116 = vector.shape_cast %115 : vector<4xf32> to vector<1x4xf32>
    %117 = vector.broadcast %116 : vector<1x4xf32> to vector<8x4xf32>
    %118 = arith.subf %114, %117 : vector<8x4xf32>
    %119 = math.exp %118 : vector<8x4xf32>
    %cst_41 = arith.constant dense<0.000000e+00> : vector<4xf32>
    %120 = vector.multi_reduction <add>, %119, %cst_41 [0] : vector<8x4xf32> to vector<4xf32>
    %121 = vector.shape_cast %120 : vector<4xf32> to vector<1x4xf32>
    %122 = math.log %121 : vector<1x4xf32>
    %123 = arith.addf %116, %122 : vector<1x4xf32>
    %124 = vector.broadcast %109 : vector<1x4xi32> to vector<8x4xi32>
    %125 = arith.cmpi eq, %110, %124 : vector<8x4xi32>
    %126 = arith.extui %125 : vector<8x4xi1> to vector<8x4xi32>
    %127 = arith.sitofp %126 : vector<8x4xi32> to vector<8x4xf32>
    %cst_42 = arith.constant 0.899999976 : f32
    %128 = vector.broadcast %cst_42 : f32 to vector<8x4xf32>
    %129 = arith.mulf %128, %127 : vector<8x4xf32>
    %cst_43 = arith.constant 5.000000e-02 : f32
    %130 = vector.broadcast %cst_43 : f32 to vector<8x4xf32>
    %131 = arith.addf %130, %129 : vector<8x4xf32>
    %cst_44 = arith.constant 0.000000e+00 : f32
    %132 = vector.broadcast %cst_44 : f32 to vector<8x4xf32>
    %133 = arith.select %112, %131, %132 : vector<8x4xi1>, vector<8x4xf32>
    %134 = arith.mulf %133, %108 : vector<8x4xf32>
    %cst_45 = arith.constant dense<0.000000e+00> : vector<4xf32>
    %135 = vector.multi_reduction <add>, %134, %cst_45 [0] : vector<8x4xf32> to vector<4xf32>
    %136 = vector.shape_cast %135 : vector<4xf32> to vector<1x4xf32>
    %c0_i32_46 = arith.constant 0 : i32
    %137 = vector.broadcast %c0_i32_46 : i32 to vector<1x4xi32>
    %138 = arith.cmpi sge, %109, %137 : vector<1x4xi32>
    %139 = arith.extui %138 : vector<1x4xi1> to vector<1x4xi32>
    %140 = arith.sitofp %139 : vector<1x4xi32> to vector<1x4xf32>
    %141 = arith.subf %123, %136 : vector<1x4xf32>
    %142 = arith.mulf %141, %140 : vector<1x4xf32>
    %c3_47 = arith.constant 3 : index
    %c0_48 = arith.constant 0 : index
    %143 = vector.load %arg3[%c3_47, %c0_48] : memref<4x4xf32, #tpu.memory_space<vmem>>, vector<1x4xf32>
    tpu.vector_store %arg3[%c3_47, %c0_48], %142 {strides = array<i32>} : memref<4x4xf32, #tpu.memory_space<vmem>>, vector<1x4xf32>,
    return
  }
  func.func @transform_0(%arg0: i32) -> (i32, i32) {
    %c0_i32 = arith.constant 0 : i32
    %c0_i32_0 = arith.constant 0 : i32
    return %c0_i32, %arg0 : i32, i32
  }
  func.func @transform_1(%arg0: i32) -> (i32, i32) {
    %c0_i32 = arith.constant 0 : i32
    %c0_i32_0 = arith.constant 0 : i32
    return %c0_i32, %arg0 : i32, i32
  }
  func.func @transform_2(%arg0: i32) -> (i32, i32) {
    %c0_i32 = arith.constant 0 : i32
    %c0_i32_0 = arith.constant 0 : i32
    return %c0_i32, %arg0 : i32, i32
  }
}

</mosaic_0001>

<bundles_post_ra>
// kernel: _hier_loss.1
= control target key start
LH: loop header
LB: loop body
LE: loop exit
PB: predicated region body
PF: predicated region fallthrough
CT: control target
= control target key end

     0   :  { %v13_v0 = vlaneseq  ;;  %vm17_vm0 = vcmask 31744   ;;  %v226_v13 = vmov 0.0   ;;  %vm58_vm10 = vcmask 24576   ;;  %s366_s0 = inlined_call_operand.vmem [shape: f32[32,4], index: 0, kind: input, shape index: {}]   ;;  %s367_s1 = inlined_call_operand.vmem [shape: s32[4,4], index: 1, kind: input, shape index: {}]   ;;  %s368_s2 = inlined_call_operand.vmem [shape: f32[4,4], index: 2, kind: output, shape index: {}]  }
   0x1   :  { %v206_v1 = vld [vmem:[%s367_s1] ss:$0 sm:$0xff]  ;;  %v253_v4 = vld [vmem:[%s366_s0 + $0x8] sm:$0xff]  ;;  %v207_v5 = vld [vmem:[%s367_s1 + $0x1] ss:$0 sm:$0xff] }
   0x2   :  { %v11_v2 = vld [vmem:[%s366_s0] sm:$0xff]  ;;  %v248_v3 = vshrl.u32 %v13_v0, 7  ;;  %v263_v6 = vld [vmem:[%s366_s0 + $0x10] sm:$0xff]  ;;  %v284_v17 = vld [vmem:[%s366_s0 + $0x18] sm:$0xff] }
   0x3   :  { %v208_v9 = vld [vmem:[%s367_s1 + $0x2] ss:$0 sm:$0xff]  ;;  %v209_v25 = vld [vmem:[%s367_s1 + $0x3] ss:$0 sm:$0xff] }
   0x4   :  { %vm15_vm1 = vcmp.lt.s32.totalorder %v248_v3, 3  ;;  %vm39_vm2 = vcmp.eq.s32.totalorder %v248_v3, %v206_v1  ;;  %vm106_vm3 = vcmp.lt.s32.totalorder %v248_v3, 2  ;;  %vm84_vm4 = vcmp.eq.s32.totalorder %v248_v3, %v207_v5 }
   0x5   :  { %v16_v7 = vsel %vm15_vm1, %v11_v2, -1e+30  ;;  %v62_v8 = vsel %vm15_vm1, %v253_v4, -1e+30  ;;  %v197_v14 = vsel %vm39_vm2, 1.0, %v226_v13  ;;  %v199_v18 = vsel %vm84_vm4, 1.0, %v226_v13 }
   0x6   :  { %v18_v10 = vsel %vm17_vm0, %v16_v7, -inf  ;;  %v63_v11 = vsel %vm17_vm0, %v62_v8, -inf  ;;  %v107_v16 = vsel %vm106_vm3, %v263_v6, -1e+30  ;;  %vm129_vm5 = vcmp.eq.s32.totalorder %v248_v3, %v208_v9 }
   0x7   :  { %v19_v12 = vrot.slane %v18_v10, 4  ;;  %v64_v15 = vrot.slane %v63_v11, 4  ;;  %v108_v19 = vsel %vm17_vm0, %v107_v16, -inf  ;;  %v42_v23 = vmul.f32 0.9, %v197_v14 }
   0x8   :  { %v109_v22 = vrot.slane %v108_v19, 4  ;;  %v151_v24 = vsel %vm106_vm3, %v284_v17, -1e+30  ;;  %v87_v28 = vmul.f32 0.9, %v199_v18  ;;  %v201_v30 = vsel %vm129_vm5, 1.0, %v226_v13 }
   0x9   :  { %v20_v20 = vmax.f32 %v18_v10, %v19_v12  ;;  %v65_v21 = vmax.f32 %v63_v11, %v64_v15  ;;  %v152_v31 = vsel %vm17_vm0, %v151_v24, -inf  ;;  %v43_v34 = vadd.f32 0.033333335, %v42_v23 }
   0xa   :  { %v110_v29 = vmax.f32 %v108_v19, %v109_v22  ;;  %vm173_vm6 = vcmp.eq.s32.totalorder %v248_v3, %v209_v25  ;;  %v132_v38 = vmul.f32 0.9, %v201_v30  ;;  %v153_v39 = vrot.slane %v152_v31, 4 }
   0xb   :  { %v21_v26 = vrot.slane %v20_v20, 2  ;;  %v66_v27 = vrot.slane %v65_v21, 2  ;;  %v88_v40 = vadd.f32 0.033333335, %v87_v28  ;;  %v203_v45 = vsel %vm173_vm6, 1.0, %v226_v13 }
   0xc   :  { %v111_v35 = vrot.slane %v110_v29, 2  ;;  %v154_v44 = vmax.f32 %v152_v31, %v153_v39  ;;  %v44_v46 = vsel %vm15_vm1, %v43_v34, 0.0  ;;  %v133_v50 = vadd.f32 0.05, %v132_v38 }
   0xd   :  { %v22_v32 = vmax.f32 %v20_v20, %v21_v26  ;;  %v67_v33 = vmax.f32 %v65_v21, %v66_v27  ;;  %v89_v52 = vsel %vm15_vm1, %v88_v40, 0.0  ;;  %v176_v54 = vmul.f32 0.9, %v203_v45 }
   0xe   :  { %v112_v41 = vmax.f32 %v110_v29, %v111_v35  ;;  %v155_v51 = vrot.slane %v154_v44, 2  ;;  %v45_v57 = vmul.f32 %v44_v46, %v11_v2  ;;  %v90_v60 = vmul.f32 %v89_v52, %v253_v4 }
   0xf   :  { %v23_v36 = vrot.slane %v22_v32, 1  ;;  %v68_v37 = vrot.slane %v67_v33, 1  ;;  %v134_v61 = vsel %vm106_vm3, %v133_v50, 0.0  ;;  %v177_v63 = vadd.f32 0.05, %v176_v54 }
  0x10   :  { %v113_v47 = vrot.slane %v112_v41, 1  ;;  %v156_v56 = vmax.f32 %v154_v44, %v155_v51  ;;  %v46_v5 = vsel %vm17_vm0, %v45_v57, 0.0  ;;  %v91_v2 = vsel %vm17_vm0, %v90_v60, 0.0  ;;  %v61_v60 = vld [vmem:[%s367_s1 + $0x1] sm:$0x1] }
  0x11   :  { %v298_v42 = vmax.f32 %v22_v32, %v23_v36  ;;  %v300_v43 = vmax.f32 %v67_v33, %v68_v37  ;;  %v178_v4 = vsel %vm106_vm3, %v177_v63, 0.0  ;;  %v47_v10 = vrot.slane %v46_v5, 4 }
  0x12   :  { %v309_v53 = vmax.f32 %v112_v41, %v113_v47  ;;  %v157_v62 = vrot.slane %v156_v56, 1  ;;  %v92_v15 = vrot.slane %v91_v2, 4  ;;  %v179_v19 = vmul.f32 %v178_v4, %v284_v17 }
  0x13   :  { %v25_v48 = vsub.f32 %v16_v7, %v298_v42  ;;  %v70_v49 = vsub.f32 %v62_v8, %v300_v43  ;;  %v135_v7 = vmul.f32 %v134_v61, %v263_v6  ;;  %v48_v3 = vadd.f32 %v47_v10, %v46_v5 }
  0x14   :  { %v115_v59 = vsub.f32 %v107_v16, %v309_v53  ;;  %v315_v1 = vmax.f32 %v156_v56, %v157_v62  ;;  %v93_v27 = vadd.f32 %v92_v15, %v91_v2  ;;  %v180_v29 = vsel %vm17_vm0, %v179_v19, 0.0 }
  0x15   :  { %v26_v55 = vmul.f32 1.442695, %v25_v48  ;;  %v71_v58 = vmul.f32 1.442695, %v70_v49  ;;  %v136_v16 = vsel %vm17_vm0, %v135_v7, 0.0  ;;  %v49_v33 = vrot.slane %v48_v3, 2 }
  0x16   :  { %v116_v0 = vmul.f32 1.442695, %v115_v59  ;;  %v159_v8 = vsub.f32 %v151_v24, %v315_v1  ;;  %v137_v25 = vrot.slane %v136_v16, 4  ;;  %v181_v37 = vrot.slane %v180_v29, 4 }
  0x17   :  { %210 = vpow2.f32 %v26_v55  ;;  %v94_v39 = vrot.slane %v93_v27, 2  ;;  %v50_v48 = vadd.f32 %v49_v33, %v48_v3  ;;  %vm98_vm8 = vcmp.ge.s32.totalorder %v61_v60, 0 }
  0x18   :  { %212 = vpow2.f32 %v71_v58  ;;  %v160_v11 = vmul.f32 1.442695, %v159_v8  ;;  %v138_v17 = vadd.f32 %v137_v25, %v136_v16  ;;  %v182_v51 = vadd.f32 %v181_v37, %v180_v29  ;;  %v12_v58 = vld [vmem:[%s367_s1] sm:$0x1] }
  0x19   :  { %214 = vpow2.f32 %v116_v0  ;;  %v95_v52 = vadd.f32 %v94_v39, %v93_v27  ;;  %v51_v59 = vrot.slane %v50_v48, 1  ;;  %vm53_vm7 = vcmp.ge.s32.totalorder %v12_v58, 0 }
  0x1a   :  { %216 = vpow2.f32 %v160_v11  ;;  %v139_v50 = vrot.slane %v138_v17, 2  ;;  %v183_v62 = vrot.slane %v182_v51, 2  ;;  %v200_v19 = vsel %vm98_vm8, 1.0, %v226_v13 }
  0x1b   :  { %v96_v63 = vrot.slane %v95_v52, 1  ;;  %v52_v4 = vadd.f32 %v51_v59, %v50_v48 }
  0x1c   :  { %v140_v61 = vadd.f32 %v139_v50, %v138_v17  ;;  %v184_v11 = vadd.f32 %v183_v62, %v182_v51 }
  0x1d   :  { %v211_v9 = vpop.eup %210 }
  0x1e   :  { %v213_v12 = vpop.eup %212  ;;  %v28_v14 = vsel %vm17_vm0, %v211_v9, 0.0  ;;  %v105_v9 = vld [vmem:[%s367_s1 + $0x2] sm:$0x1]  ;;  %v141_v10 = vrot.slane %v140_v61, 1  ;;  %v185_v3 = vrot.slane %v184_v11, 1 }
  0x1f   :  { %v29_v18 = vrot.slane %v28_v14, 4  ;;  %v73_v6 = vsel %vm17_vm0, %v213_v12, 0.0  ;;  %v215_v21 = vpop.eup %214  ;;  %vm143_vm9 = vcmp.ge.s32.totalorder %v105_v9, 0 }
  0x20   :  { %v74_v20 = vrot.slane %v73_v6, 4  ;;  %v118_v24 = vsel %vm17_vm0, %v215_v21, 0.0  ;;  %v217_v31 = vpop.eup %216 }
  0x21   :  { %v30_v22 = vadd.f32 %v29_v18, %v28_v14  ;;  %v119_v28 = vrot.slane %v118_v24, 4  ;;  %v162_v36 = vsel %vm17_vm0, %v217_v31, 0.0  ;;  %v97_v14 = vadd.f32 %v96_v63, %v95_v52 }
  0x22   :  { %v75_v23 = vadd.f32 %v74_v20, %v73_v6  ;;  %v163_v41 = vrot.slane %v162_v36, 4  ;;  %v198_v18 = vsel %vm53_vm7, 1.0, %v226_v13 }
  0x23   :  { %v31_v26 = vrot.slane %v30_v22, 2  ;;  %v120_v34 = vadd.f32 %v119_v28, %v118_v24  ;;  %v150_v24 = vld [vmem:[%s367_s1 + $0x3] sm:$0x1] }
  0x24   :  { %v76_v30 = vrot.slane %v75_v23, 2  ;;  %v164_v47 = vadd.f32 %v163_v41, %v162_v36  ;;  %vm187_vm11 = vcmp.ge.s32.totalorder %v150_v24, 0 }
  0x25   :  { %v32_v32 = vadd.f32 %v31_v26, %v30_v22  ;;  %v121_v40 = vrot.slane %v120_v34, 2  ;;  %v142_v22 = vadd.f32 %v141_v10, %v140_v61 }
  0x26   :  { %v77_v35 = vadd.f32 %v76_v30, %v75_v23  ;;  %v165_v55 = vrot.slane %v164_v47, 2  ;;  %v186_v30 = vadd.f32 %v185_v3, %v184_v11 }
  0x27   :  { %v33_v38 = vrot.slane %v32_v32, 1  ;;  %v122_v46 = vadd.f32 %v121_v40, %v120_v34 }
  0x28   :  { %v78_v44 = vrot.slane %v77_v35, 1  ;;  %v166_v57 = vadd.f32 %v165_v55, %v164_v47 }
  0x29   :  { %v34_v45 = vadd.f32 %v33_v38, %v32_v32  ;;  %v123_v54 = vrot.slane %v122_v46, 1  ;;  %v204_v32 = vsel %vm187_vm11, 1.0, %v226_v13 }
  0x2a   :  { %v79_v49 = vadd.f32 %v78_v44, %v77_v35  ;;  %v167_v0 = vrot.slane %v166_v57, 1 }
  0x2b   :  { %218 = vlog2.f32 %v34_v45  ;;  %v124_v56 = vadd.f32 %v123_v54, %v122_v46 }
  0x2c   :  { %220 = vlog2.f32 %v79_v49  ;;  %v168_v7 = vadd.f32 %v167_v0, %v166_v57 }
  0x2d   :  { %222 = vlog2.f32 %v124_v56 }
  0x2e   :  { %224 = vlog2.f32 %v168_v7 }
  0x31   :  { %v219_v5 = vpop.eup %218 }
  0x32   :  { %v221_v2 = vpop.eup %220  ;;  %v36_v8 = vmul.f32 0.6931472, %v219_v5 }
  0x33   :  { %v81_v12 = vmul.f32 0.6931472, %v221_v2  ;;  %v223_v16 = vpop.eup %222 }
  0x34   :  { %v37_v15 = vadd.f32 %v36_v8, %v298_v42  ;;  %v126_v21 = vmul.f32 0.6931472, %v223_v16  ;;  %v225_v26 = vpop.eup %224 }
  0x35   :  { %v82_v6 = vadd.f32 %v81_v12, %v300_v43  ;;  %v202_v43 = vsel %vm143_vm9, 1.0, %v226_v13  ;;  %v170_v29 = vmul.f32 0.6931472, %v225_v26 }
  0x36   :  { %v56_v20 = vsub.f32 %v37_v15, %v52_v4  ;;  %v127_v42 = vadd.f32 %v126_v21, %v309_v53 }
  0x37   :  { %v101_v23 = vsub.f32 %v82_v6, %v97_v14  ;;  %v171_v53 = vadd.f32 %v170_v29, %v315_v1 }
  0x38   :  { %v57_v25 = vmul.f32 %v198_v18, %v56_v20  ;;  %v146_v28 = vsub.f32 %v127_v42, %v142_v22 }
  0x39   :  { %v102_v27 = vmul.f32 %v200_v19, %v101_v23  ;;  %v190_v33 = vsub.f32 %v171_v53, %v186_v30 }
  0x3a   :  { %59 = vst.msk [vmem:[%s368_s2] sm:$0x1] %vm58_vm10, %v57_v25  ;;  %v147_v31 = vmul.f32 %v202_v43, %v146_v28 }
  0x3b   :  { %103 = vst.msk [vmem:[%s368_s2 + $0x1] sm:$0x1] %vm58_vm10, %v102_v27  ;;  %v191_v34 = vmul.f32 %v204_v32, %v190_v33 }
  0x3c   :  { %148 = vst.msk [vmem:[%s368_s2 + $0x2] sm:$0x1] %vm58_vm10, %v147_v31 }
  0x3d   :  { %192 = vst.msk [vmem:[%s368_s2 + $0x3] sm:$0x1] %vm58_vm10, %v191_v34 }

</bundles_post_ra>
